<compile_context>
chip_gen: v6e
topology: v6e:2x2x1
jax: 0.10.0
libtpu: 0.0.40
codegen_flags: <defaults>
</compile_context>

<pallas_src>
import functools

import jax
import jax.numpy as jnp
from jax.experimental import pallas as pl
from jax.experimental.pallas import tpu as pltpu


def _round_up(x, m):
    return (x + m - 1) // m * m


def _noise_student_kernel(img_ref, aux_ref, w_img_ref, w_aux_ref, out_ref, *, inv_t):
    # img_ref  : [TB, C, HW] f32  raw image tile (no HBM feature slab)
    # aux_ref  : [TB, A_pad] f32  [loc | text | 1 | 0-pad]
    # w_img_ref: [C, K_pad]  f32
    # w_aux_ref: [A_pad, K_pad] f32  (loc/text weights, bias row, -1e30 class mask)
    pooled = jnp.mean(img_ref[...], axis=-1)                      # XLU reduce over HW -> [TB, C]
    logits = jnp.dot(pooled, w_img_ref[...],
                     preferred_element_type=jnp.float32)          # [TB, K_pad]
    logits = logits + jnp.dot(aux_ref[...], w_aux_ref[...],
                              preferred_element_type=jnp.float32)

    # softmax(logits, -1) ** (1/T) == exp((z - log(sum exp z)) * (1/T)), z = logits - max
    m = jnp.max(logits, axis=-1, keepdims=True)
    z = logits - m
    denom = jnp.sum(jnp.exp(z), axis=-1, keepdims=True)           # >= 1, log is safe
    out_ref[...] = jnp.exp((z - jnp.log(denom)) * inv_t)


def make_params(key, channels, context_length, num_classes):
    """Deterministic synthetic 'model_state' (stand-in for the checkpoint)."""
    k1, k2, k3, k4 = jax.random.split(key, 4)
    return {
        "w_img": jax.random.normal(k1, (channels, num_classes), jnp.float32) * 0.1,
        "w_loc": jax.random.normal(k2, (2, num_classes), jnp.float32) * 0.1,
        "w_text": jax.random.normal(k3, (context_length, num_classes), jnp.float32) * 0.1,
        "b": jax.random.normal(k4, (1, num_classes), jnp.float32) * 0.1,
    }


def _pick_batch_tile(B, row_bytes, *, max_tile=256, tile_budget_bytes=24 << 20):
    """Batch tile that scales with B, bounded by a double-buffered VMEM budget."""
    vmem_cap = max(8, ((tile_budget_bytes // (2 * row_bytes)) // 8) * 8)
    tile = min(max_tile, vmem_cap, _round_up(B, 8))
    # v7x has 2 TensorCores: if a large batch would land in a single grid step,
    # split it in two so both cores get work (negligible cost on v5e/v6e).
    if B >= 128 and _round_up(B, tile) == tile:
        tile = min(max(8, _round_up((B + 1) // 2, 8)), vmem_cap)
    return tile


def noise_student_collate(img, loc, text, params, t, *, batch_tile=None):
    """Mirrors NoiseStudentCollateFunction.forward on an already-stacked batch.

    img  : [B, C, H, W] float32  (NCHW, like torch.stack(img))
    loc  : [B, 2]       float32  (torch.tensor(loc).view(-1, 2))
    text : [B, L]       int32    (torch.tensor(text).view(-1, context_length))
    returns (img, pseudolabel, loc, text)
    """
    B, C, H, W = img.shape
    HW = H * W
    K = params["w_img"].shape[1]
    L = params["w_text"].shape[0]

    K_pad = _round_up(K, 128)            # lane-dense output stores
    A = 2 + L + 1                        # loc + text + bias-ones
    A_pad = _round_up(A, 128)            # lane-dense aux operand

    if batch_tile is None:
        row_bytes = (C * HW + A_pad + K_pad) * 4
        batch_tile = _pick_batch_tile(B, row_bytes)
    batch_tile = max(8, _round_up(batch_tile, 8))
    B_pad = _round_up(B, batch_tile)

    # Image goes straight into the kernel: free reshape, no feature-slab copy.
    img3 = img.reshape(B, C, HW).astype(jnp.float32)

    # Tiny auxiliary features: [loc | text | 1 | 0-pad] -> [B, A_pad]
    aux = jnp.concatenate(
        [loc.astype(jnp.float32),
         text.astype(jnp.float32),
         jnp.ones((B, 1), jnp.float32)], axis=1)
    aux = jnp.pad(aux, ((0, 0), (0, A_pad - A)))

    if B_pad != B:  # batch padding only when actually needed (no copy otherwise)
        img3 = jnp.pad(img3, ((0, B_pad - B), (0, 0), (0, 0)))
        aux = jnp.pad(aux, ((0, B_pad - B), (0, 0)))

    # Small weights: mean-pool happens in-kernel, so no HW-folded blow-up.
    w_img = jnp.zeros((C, K_pad), jnp.float32).at[:, :K].set(params["w_img"])
    w_aux = jnp.zeros((A_pad, K_pad), jnp.float32)
    w_aux = w_aux.at[0:2, :K].set(params["w_loc"])
    w_aux = w_aux.at[2:2 + L, :K].set(params["w_text"])
    w_aux = w_aux.at[2 + L, :K].set(params["b"][0])
    # Padded class columns: huge negative bias via the ones column so they
    # vanish from the softmax of real rows (padded batch rows stay finite).
    w_aux = w_aux.at[2 + L, K:].set(-1e30)

    kernel = functools.partial(_noise_student_kernel, inv_t=1.0 / float(t))

    # Explicit VMEM budget: double-buffered img/aux/out tiles + weights + headroom,
    # capped at 48 MiB so the tiling is valid on v7x (64 MiB physical VMEM).
    img_tile_b = batch_tile * C * HW * 4
    aux_tile_b = batch_tile * A_pad * 4
    out_tile_b = batch_tile * K_pad * 4
    w_bytes = (C * K_pad + A_pad * K_pad) * 4
    vmem_limit = 2 * (img_tile_b + aux_tile_b + out_tile_b) + 2 * w_bytes + (4 << 20)
    vmem_limit = int(min(max(vmem_limit, 16 << 20), 48 << 20))

    out_pad = pl.pallas_call(
        kernel,
        out_shape=jax.ShapeDtypeStruct((B_pad, K_pad), jnp.float32),
        grid_spec=pltpu.PrefetchScalarGridSpec(
            num_scalar_prefetch=0,
            grid=(B_pad // batch_tile,),
            in_specs=[
                pl.BlockSpec((batch_tile, C, HW), lambda b: (b, 0, 0)),  # image tile
                pl.BlockSpec((batch_tile, A_pad), lambda b: (b, 0)),     # aux features
                pl.BlockSpec((C, K_pad), lambda b: (0, 0)),              # tiny, VMEM-resident
                pl.BlockSpec((A_pad, K_pad), lambda b: (0, 0)),          # tiny, VMEM-resident
            ],
            out_specs=pl.BlockSpec((batch_tile, K_pad), lambda b: (b, 0)),
        ),
        compiler_params=pltpu.CompilerParams(
            dimension_semantics=("parallel",),   # v7x: shard batch steps across 2 TCs
            vmem_limit_bytes=vmem_limit,
        ),
    )(img3, aux, w_img, w_aux)

    pseudolabel = out_pad[:B, :K]
    return img, pseudolabel, loc, text


def _reference(img, loc, text, params, t):
    B, C, H, W = img.shape
    pooled = jnp.mean(img.reshape(B, C, H * W).astype(jnp.float32), axis=-1)
    logits = (pooled @ params["w_img"]
              + loc.astype(jnp.float32) @ params["w_loc"]
              + text.astype(jnp.float32) @ params["w_text"]
              + params["b"])
    return jax.nn.softmax(logits, axis=1) ** (1.0 / t)


if __name__ == "__main__":
    key = jax.random.PRNGKey(0)
    k_img, k_loc, k_text, k_params = jax.random.split(key, 4)

    B, C, H, W = 2, 4, 16, 16          # batch of stacked images (NCHW)
    context_length = 8                 # text token window
    num_classes = 32                   # model output classes
    T = 2.0                            # temperature

    img = jax.random.normal(k_img, (B, C, H, W), jnp.float32)
    loc = jax.random.uniform(k_loc, (B, 2), jnp.float32, minval=-90.0, maxval=90.0)
    text = jax.random.randint(k_text, (B, context_length), 0, 100, jnp.int32)

    params = make_params(k_params, C, context_length, num_classes)

    img_out, pseudolabel, loc_out, text_out = noise_student_collate(
        img, loc, text, params, T)
    jax.block_until_ready(pseudolabel)

    ref = _reference(img, loc, text, params, T)
    assert pseudolabel.shape == (B, num_classes)
    assert jnp.allclose(pseudolabel, ref, atol=1e-4, rtol=1e-4), "mismatch vs reference"

    # TODO(synk): the real backbone (build_model + checkpoint) is opaque; a
    # deterministic synthetic linear head is used in its place.
    print("KERNEL_OK")
</pallas_src>

<mosaic_0001>
module attributes {stable_mosaic.version = 11 : i64} {
  func.func @_noise_student_kernel(%arg0: i32, %arg1: memref<8x4x256xf32, #tpu.memory_space<vmem>>, %arg2: memref<8x128xf32, #tpu.memory_space<vmem>>, %arg3: memref<4x128xf32, #tpu.memory_space<vmem>>, %arg4: memref<128x128xf32, #tpu.memory_space<vmem>>, %arg5: memref<8x128xf32, #tpu.memory_space<vmem>>) attributes {dimension_semantics = [#tpu.dimension_semantics<parallel>], iteration_bounds = array<i64: 1>, scalar_prefetch = 0 : i64, scratch_operands = 0 : i64, tpu.core_type = #tpu.core_type<tc>, window_params = [{transform_indices = @transform_0, window_bounds = array<i64: 8, 4, 256>}, {transform_indices = @transform_1, window_bounds = array<i64: 8, 128>}, {pipeline_mode = #tpu.pipeline_mode<synchronous>, transform_indices = @transform_2, window_bounds = array<i64: 4, 128>}, {pipeline_mode = #tpu.pipeline_mode<synchronous>, transform_indices = @transform_3, window_bounds = array<i64: 128, 128>}, {transform_indices = @transform_4, window_bounds = array<i64: 8, 128>}]} {
    %c0 = arith.constant 0 : index
    %c0_0 = arith.constant 0 : index
    %c0_1 = arith.constant 0 : index
    %0 = vector.load %arg1[%c0, %c0_0, %c0_1] : memref<8x4x256xf32, #tpu.memory_space<vmem>>, vector<8x4x256xf32>
    %cst = arith.constant dense<0.000000e+00> : vector<8x4xf32>
    %1 = vector.multi_reduction <add>, %0, %cst [2] : vector<8x4x256xf32> to vector<8x4xf32>
    %cst_2 = arith.constant 2.560000e+02 : f32
    %2 = vector.broadcast %cst_2 : f32 to vector<8x4xf32>
    %3 = arith.divf %1, %2 : vector<8x4xf32>
    %c0_3 = arith.constant 0 : index
    %c0_4 = arith.constant 0 : index
    %4 = vector.load %arg3[%c0_3, %c0_4] : memref<4x128xf32, #tpu.memory_space<vmem>>, vector<4x128xf32>
    %cst_5 = arith.constant dense<0.000000e+00> : vector<8x128xf32>
    %5 = tpu.matmul %3, %4, %cst_5 {dimension_numbers = #tpu.dot_dimension_numbers<[1], [0], [0], [1], [0, 0, 1, 1], [], []>} : vector<8x4xf32>, vector<4x128xf32>, vector<8x128xf32> -> vector<8x128xf32>
    %c0_6 = arith.constant 0 : index
    %c0_7 = arith.constant 0 : index
    %6 = vector.load %arg2[%c0_6, %c0_7] : memref<8x128xf32, #tpu.memory_space<vmem>>, vector<8x128xf32>
    %c0_8 = arith.constant 0 : index
    %c0_9 = arith.constant 0 : index
    %7 = vector.load %arg4[%c0_8, %c0_9] : memref<128x128xf32, #tpu.memory_space<vmem>>, vector<128x128xf32>
    %cst_10 = arith.constant dense<0.000000e+00> : vector<8x128xf32>
    %8 = tpu.matmul %6, %7, %cst_10 {dimension_numbers = #tpu.dot_dimension_numbers<[1], [0], [0], [1], [0, 0, 1, 1], [], []>} : vector<8x128xf32>, vector<128x128xf32>, vector<8x128xf32> -> vector<8x128xf32>
    %9 = arith.addf %5, %8 : vector<8x128xf32>
    %cst_11 = arith.constant dense<0xFF800000> : vector<8xf32>
    %10 = vector.multi_reduction <maximumf>, %9, %cst_11 [1] : vector<8x128xf32> to vector<8xf32>
    %11 = vector.shape_cast %10 : vector<8xf32> to vector<8x1xf32>
    %12 = vector.broadcast %11 : vector<8x1xf32> to vector<8x128xf32>
    %13 = arith.subf %9, %12 : vector<8x128xf32>
    %14 = math.exp %13 : vector<8x128xf32>
    %cst_12 = arith.constant dense<0.000000e+00> : vector<8xf32>
    %15 = vector.multi_reduction <add>, %14, %cst_12 [1] : vector<8x128xf32> to vector<8xf32>
    %16 = vector.shape_cast %15 : vector<8xf32> to vector<8x1xf32>
    %17 = math.log %16 : vector<8x1xf32>
    %18 = vector.broadcast %17 : vector<8x1xf32> to vector<8x128xf32>
    %19 = arith.subf %13, %18 : vector<8x128xf32>
    %cst_13 = arith.constant 5.000000e-01 : f32
    %20 = vector.broadcast %cst_13 : f32 to vector<8x128xf32>
    %21 = arith.mulf %19, %20 : vector<8x128xf32>
    %22 = math.exp %21 : vector<8x128xf32>
    %c0_14 = arith.constant 0 : index
    %c0_15 = arith.constant 0 : index
    %23 = vector.load %arg5[%c0_14, %c0_15] : memref<8x128xf32, #tpu.memory_space<vmem>>, vector<8x128xf32>
    tpu.vector_store %arg5[%c0_14, %c0_15], %22 {strides = array<i32>} : memref<8x128xf32, #tpu.memory_space<vmem>>, vector<8x128xf32>,
    return
  }
  func.func @transform_0(%arg0: i32) -> (i32, i32, i32) {
    %c0_i32 = arith.constant 0 : i32
    %c0_i32_0 = arith.constant 0 : i32
    %c0_i32_1 = arith.constant 0 : i32
    return %arg0, %c0_i32, %c0_i32_0 : i32, i32, i32
  }
  func.func @transform_1(%arg0: i32) -> (i32, i32) {
    %c0_i32 = arith.constant 0 : i32
    %c0_i32_0 = arith.constant 0 : i32
    return %arg0, %c0_i32 : i32, i32
  }
  func.func @transform_2(%arg0: i32) -> (i32, i32) {
    %c0_i32 = arith.constant 0 : i32
    %c0_i32_0 = arith.constant 0 : i32
    %c0_i32_1 = arith.constant 0 : i32
    return %c0_i32, %c0_i32_0 : i32, i32
  }
  func.func @transform_3(%arg0: i32) -> (i32, i32) {
    %c0_i32 = arith.constant 0 : i32
    %c0_i32_0 = arith.constant 0 : i32
    %c0_i32_1 = arith.constant 0 : i32
    return %c0_i32, %c0_i32_0 : i32, i32
  }
  func.func @transform_4(%arg0: i32) -> (i32, i32) {
    %c0_i32 = arith.constant 0 : i32
    %c0_i32_0 = arith.constant 0 : i32
    return %arg0, %c0_i32 : i32, i32
  }
}

</mosaic_0001>

<bundles_post_ra>
// kernel: tpu_custom_call.1
= control target key start
LH: loop header
LB: loop body
LE: loop exit
PB: predicated region body
PF: predicated region fallthrough
CT: control target
= control target key end

     0   :  { %9 = vsyncpa [#allocation3], 0  ;;  %s679_s0 = inlined_call_operand.hbm [shape: f32[8,4,256], index: 0, kind: input, shape index: {}]   ;;  %s680_s1 = inlined_call_operand.hbm [shape: f32[8,128], index: 1, kind: input, shape index: {}]   ;;  %s681_s2 = inlined_call_operand.hbm [shape: f32[4,128], index: 2, kind: input, shape index: {}]   ;;  %s682_s3 = inlined_call_operand.hbm [shape: f32[128,128], index: 3, kind: input, shape index: {}]   ;;  %s683_s4 = inlined_call_operand.hbm [shape: f32[8,128], index: 4, kind: output, shape index: {}]  }
   0x1   :  { %10 = vsyncpa [#allocation6], 0 }
   0x2   :  { %11 = vsyncpa [#allocation9], 0 }
   0x3   :  { %12 = vsyncpa [#allocation4], 0  ;;  %s594_s15 = smov [#allocation5]   ;;  %s595_s17 = smov [#allocation2]  }
   0x4   :  { %s31_s16 = sshll.u32 %s594_s15, 4  ;;  %s18_s18 = sshll.u32 %s595_s17, 4  ;;  %s32_s16 = int_to_ptr.vmem [resolvable:$true] %s31_s16  ;;  %s19_s18 = int_to_ptr.vmem [resolvable:$true] %s18_s18 }
   0x5   :  { %s494_s19 = scalar_lea.vmem %s32_s16, 128  ;;  %p499_p1 = scmp.lt.s32.totalorder %s32_s16, %s32_s16 }
   0x6   :  { %p495_p0 = scmp.ne.s32.totalorder %s32_s16, %s494_s19  ;;  %p500_p2 = scmp.lt.s32.totalorder %s494_s19, %s494_s19 }
   0x8   :  { %p501_p3 = por %p500_p2, %p499_p1 }
   0xa   :  { %p502_p4 = pnand %p501_p3, %p495_p0 }
   0xc   :  { %505 = shalt.err (!%p502_p4)
}
   0xd   :  { %34 = dma.hbm_to_vmem [thread:$0]  %s680_s1, 128, %s32_s16, [#allocation6]  }
   0xe   :  { %s514_s22 = scalar_lea.vmem %s19_s18, 1024  ;;  %p519_p6 = scmp.lt.s32.totalorder %s19_s18, %s19_s18 }
   0xf   :  { %p515_p5 = scmp.ne.s32.totalorder %s19_s18, %s514_s22  ;;  %p520_p7 = scmp.lt.s32.totalorder %s514_s22, %s514_s22 }
  0x11   :  { %p521_p8 = por %p520_p7, %p519_p6 }
  0x13   :  { %p522_p9 = pnand %p521_p8, %p515_p5 }
  0x15   :  { %525 = shalt.err (!%p522_p9)
}
  0x16   :  { %s596_s23 = smov 128   ;;  %s597_s24 = smov 8  }
  0x17   :  { %24 = dma.hbm_to_vmem [thread:$0]  %s679_s0, 1024, %s19_s18, [#allocation3], %s596_s23, %s596_s23, %s597_s24  }
  0x18   :  { %s598_s27 = smov [#allocation7]   ;;  %s599_s29 = smov [#allocation8]  }
  0x19   :  { %s41_s28 = sshll.u32 %s598_s27, 4  ;;  %s50_s30 = sshll.u32 %s599_s29, 4  ;;  %s42_s28 = int_to_ptr.vmem [resolvable:$true] %s41_s28  ;;  %s51_s30 = int_to_ptr.vmem [resolvable:$true] %s50_s30 }
  0x1a   :  { %s534_s1 = scalar_lea.vmem %s42_s28, 64  ;;  %p539_p11 = scmp.lt.s32.totalorder %s42_s28, %s42_s28 }
  0x1b   :  { %p535_p10 = scmp.ne.s32.totalorder %s42_s28, %s534_s1  ;;  %p540_p12 = scmp.lt.s32.totalorder %s534_s1, %s534_s1 }
  0x1d   :  { %p541_p13 = por %p540_p12, %p539_p11 }
  0x1f   :  { %p542_p0 = pnand %p541_p13, %p535_p10 }
  0x21   :  { %545 = shalt.err (!%p542_p0)
}
  0x22   :  { %44 = dma.hbm_to_vmem [thread:$0]  %s681_s2, 64, %s42_s28, [#allocation6]  }
  0x23   :  { %s554_s7 = scalar_lea.vmem %s51_s30, 2048  ;;  %p559_p2 = scmp.lt.s32.totalorder %s51_s30, %s51_s30 }
  0x24   :  { %p555_p1 = scmp.ne.s32.totalorder %s51_s30, %s554_s7  ;;  %p560_p3 = scmp.lt.s32.totalorder %s554_s7, %s554_s7 }
  0x26   :  { %p561_p4 = por %p560_p3, %p559_p2 }
  0x28   :  { %p562_p5 = pnand %p561_p4, %p555_p1 }
  0x2a   :  { %565 = shalt.err (!%p562_p5)
}
  0x2b   :  { %56 = dma.hbm_to_vmem [thread:$0]  %s682_s3, 2048, %s51_s30, [#allocation9], %s596_s23, %s596_s23, %s597_s24  }
  0x2c   :  { %586 = dma.done.wait [#allocation3], 1024  }
  0x2d   :  { %587 = vsyncadd [#allocation3], 4294966272 }
  0x2e   :  { %588 = dma.done.wait [#allocation6], 192  }
  0x2f   :  { %589 = vsyncadd [#allocation6], 4294967104 }
  0x30   :  { %590 = dma.done.wait [#allocation9], 2048  }
  0x31   :  { %591 = vsyncadd [#allocation9], 4294965248  ;;  %v600_v0 = vmov 0.0   ;;  %vm101_vm0 = vcmask 1043456   ;;  %v69_v1 = vld [vmem:[#allocation2] sm:$0xff]  ;;  %v71_v2 = vld [vmem:[#allocation2 + $0x10] sm:$0xff]  ;;  %v247_v59 = vlaneseq }
  0x32   :  { %423 = vmatprep.subr.mxu0 %v600_v0  ;;  %458 = vmatprep.subr.mxu1 %v600_v0  ;;  %v70_v3 = vld [vmem:[#allocation2 + $0x8] sm:$0xff]  ;;  %v85_v4 = vcombine.high %v69_v1, %v69_v1  ;;  %v102_v5 = vsel %vm101_vm0, %v69_v1, 0.0  ;;  %v87_v6 = vcombine.high %v71_v2, %v71_v2  ;;  %v112_v7 = vsel %vm101_vm0, %v71_v2, 0.0  ;;  %v72_v8 = vld [vmem:[#allocation2 + $0x18] sm:$0xff]  ;;  %v73_v9 = vld [vmem:[#allocation2 + $0x20] sm:$0xff]  ;;  %s602_s2 = smov [#allocation10]  }
  0x33   :  { %v86_v10 = vcombine.high %v70_v3, %v70_v3  ;;  %v107_v11 = vsel %vm101_vm0, %v70_v3, 0.0  ;;  %v88_v12 = vcombine.high %v72_v8, %v72_v8  ;;  %v74_v13 = vld [vmem:[#allocation2 + $0x28] sm:$0xff]  ;;  %v117_v17 = vsel %vm101_vm0, %v72_v8, 0.0  ;;  %v167_v19 = vld [vmem:[#allocation8 + $0x70] sm:$0xff]  ;;  %v75_v24 = vld [vmem:[#allocation2 + $0x30] sm:$0xff]  ;;  %s391_s3 = sshll.u32 %s602_s2, 4  ;;  %s392_s3 = int_to_ptr.vmem [resolvable:$true] %s391_s3 }
  0x34   :  { %v168_v14 = vld [vmem:[#allocation8 + $0x78] sm:$0xff]  ;;  %v103_v15 = vsel %vm101_vm0, %v85_v4, 0.0  ;;  %v113_v16 = vsel %vm101_vm0, %v87_v6, 0.0  ;;  %v89_v18 = vcombine.high %v73_v9, %v73_v9  ;;  %v76_v25 = vld [vmem:[#allocation2 + $0x38] sm:$0xff]  ;;  %v90_v26 = vcombine.high %v74_v13, %v74_v13  ;;  %v165_v36 = vld [vmem:[#allocation8 + $0x60] sm:$0xff]  ;;  %s566_s9 = scalar_lea.vmem %s392_s3, 128  ;;  %p571_p7 = scmp.lt.s32.totalorder %s392_s3, %s392_s3 }
  0x35   :  { %424 = vmatpush3.msra.mxu0 %v168_v14  ;;  %v104_v20 = vadd.f32 %v103_v15, %v102_v5  ;;  %v114_v21 = vadd.f32 %v113_v16, %v112_v7  ;;  %v108_v22 = vsel %vm101_vm0, %v86_v10, 0.0  ;;  %v118_v23 = vsel %vm101_vm0, %v88_v12, 0.0  ;;  %v166_v27 = vld [vmem:[#allocation8 + $0x68] sm:$0xff]  ;;  %v164_v39 = vld [vmem:[#allocation8 + $0x58] sm:$0xff]  ;;  %v163_v44 = vld [vmem:[#allocation8 + $0x50] sm:$0xff]  ;;  %p567_p6 = scmp.ne.s32.totalorder %s392_s3, %s566_s9  ;;  %p572_p8 = scmp.lt.s32.totalorder %s566_s9, %s566_s9 }
  0x36   :  { %425 = vmatprep.subr.mxu0 %v600_v0  ;;  %v109_v28 = vadd.f32 %v108_v22, %v107_v11  ;;  %v119_v29 = vadd.f32 %v118_v23, %v117_v17  ;;  %v122_v30 = vsel %vm101_vm0, %v73_v9, 0.0  ;;  %v123_v31 = vsel %vm101_vm0, %v89_v18, 0.0  ;;  %v162_v47 = vld [vmem:[#allocation8 + $0x48] sm:$0xff]  ;;  %v161_v48 = vld [vmem:[#allocation8 + $0x40] sm:$0xff]  ;;  %v160_v49 = vld [vmem:[#allocation8 + $0x38] sm:$0xff] }
  0x37   :  { %426 = vmatpush3.msra.mxu0 %v167_v19  ;;  %105 = vadd.xlane.f32.xlu0 %v104_v20  ;;  %v127_v32 = vsel %vm101_vm0, %v74_v13, 0.0  ;;  %v128_v33 = vsel %vm101_vm0, %v90_v26, 0.0  ;;  %v91_v34 = vcombine.high %v75_v24, %v75_v24  ;;  %v92_v35 = vcombine.high %v76_v25, %v76_v25  ;;  %v159_v50 = vld [vmem:[#allocation8 + $0x30] sm:$0xff]  ;;  %v158_v51 = vld [vmem:[#allocation8 + $0x28] sm:$0xff]  ;;  %v157_v52 = vld [vmem:[#allocation8 + $0x20] sm:$0xff]  ;;  %p573_p9 = por %p572_p8, %p571_p7 }
  0x38   :  { %115 = vadd.xlane.f32.xlu1 %v114_v21  ;;  %427 = vmatprep.subr.mxu0 %v600_v0  ;;  %v124_v37 = vadd.f32 %v123_v31, %v122_v30  ;;  %v129_v38 = vadd.f32 %v128_v33, %v127_v32  ;;  %v132_v40 = vsel %vm101_vm0, %v75_v24, 0.0  ;;  %v137_v42 = vsel %vm101_vm0, %v76_v25, 0.0  ;;  %v156_v53 = vld [vmem:[#allocation8 + $0x18] sm:$0xff]  ;;  %v155_v54 = vld [vmem:[#allocation8 + $0x10] sm:$0xff]  ;;  %v154_v56 = vld [vmem:[#allocation8 + $0x8] sm:$0xff] }
  0x39   :  { %428 = vmatpush3.msra.mxu0 %v166_v27  ;;  %v133_v41 = vsel %vm101_vm0, %v91_v34, 0.0  ;;  %v138_v43 = vsel %vm101_vm0, %v92_v35, 0.0  ;;  %v151_v55 = vld [vmem:[#allocation7] sm:$0xf]  ;;  %vm601_vm1 = vmmov 0   ;;  %v153_v57 = vld [vmem:[#allocation8] sm:$0xff]  ;;  %p574_p10 = pnand %p573_p9, %p567_p6 }
  0x3a   :  { %429 = vmatprep.subr.mxu0 %v600_v0  ;;  %v134_v45 = vadd.f32 %v133_v41, %v132_v40  ;;  %v139_v46 = vadd.f32 %v138_v43, %v137_v42  ;;  %455 = vmatprep.mubr.msk.f32.mxu0 %vm601_vm1, %v600_v0  ;;  %v152_v58 = vld [vmem:[#allocation5] sm:$0xff]  ;;  %v248_v60 = vand.u32 127, %v247_v59  ;;  %v250_v61 = vshrl.u32 %v247_v59, 7 }
  0x3b   :  { %110 = vadd.xlane.f32.xlu0 %v109_v28  ;;  %430 = vmatpush3.msra.mxu0 %v165_v36  ;;  %vm281_vm2 = vcmask 1041409   ;;  %vm283_vm3 = vcmask 1042434   ;;  %vm285_vm4 = vcmask 1043459   ;;  %vm287_vm5 = vcmask 1044484  }
  0x3c   :  { %120 = vadd.xlane.f32.xlu1 %v119_v29  ;;  %431 = vmatprep.subr.mxu0 %v600_v0  ;;  %v251_v1 = vsub.s32 %v248_v60, %v250_v61  ;;  %vm289_vm6 = vcmask 1045509   ;;  %vm291_vm7 = vcmask 1046534   ;;  %vm293_vm8 = vcmask 1047559  }
  0x3d   :  { %432 = vmatpush3.msra.mxu0 %v164_v39  ;;  %459 = vmatpush3.msk.msra.mxu1 %vm101_vm0, %v151_v55  ;;  %vm295_vm9 = vcmask 31744  }
  0x3e   :  { %433 = vmatprep.subr.mxu0 %v600_v0  ;;  %460 = vmatprep.mubr.msk.f32.mxu1 %vm601_vm1, %v600_v0 }
  0x3f   :  { %125 = vadd.xlane.f32.xlu0 %v124_v37  ;;  %434 = vmatpush3.msra.mxu0 %v163_v44 }
  0x40   :  { %130 = vadd.xlane.f32.xlu1 %v129_v38  ;;  %435 = vmatprep.subr.mxu0 %v600_v0 }
  0x41   :  { %436 = vmatpush3.msra.mxu0 %v162_v47 }
  0x42   :  { %437 = vmatprep.subr.mxu0 %v600_v0 }
  0x43   :  { %135 = vadd.xlane.f32.xlu0 %v134_v45  ;;  %438 = vmatpush3.msra.mxu0 %v161_v48 }
  0x44   :  { %140 = vadd.xlane.f32.xlu1 %v139_v46  ;;  %439 = vmatprep.subr.mxu0 %v600_v0 }
  0x45   :  { %440 = vmatpush3.msra.mxu0 %v160_v49 }
  0x46   :  { %441 = vmatprep.subr.mxu0 %v600_v0 }
  0x47   :  { %442 = vmatpush3.msra.mxu0 %v159_v50 }
  0x48   :  { %443 = vmatprep.subr.mxu0 %v600_v0 }
  0x49   :  { %444 = vmatpush3.msra.mxu0 %v158_v51 }
  0x4a   :  { %445 = vmatprep.subr.mxu0 %v600_v0 }
  0x4b   :  { %446 = vmatpush3.msra.mxu0 %v157_v52 }
  0x4c   :  { %447 = vmatprep.subr.mxu0 %v600_v0 }
  0x4d   :  { %448 = vmatpush3.msra.mxu0 %v156_v53 }
  0x4e   :  { %449 = vmatprep.subr.mxu0 %v600_v0 }
  0x4f   :  { %450 = vmatpush3.msra.mxu0 %v155_v54 }
  0x50   :  { %451 = vmatprep.subr.mxu0 %v600_v0 }
  0x51   :  { %452 = vmatpush3.msra.mxu0 %v154_v56 }
  0x52   :  { %453 = vmatprep.subr.mxu0 %v600_v0 }
  0x53   :  { %454 = vmatpush3.msra.mxu0 %v153_v57 }
  0x54   :  { %456 = vmatmul.mubr.f32.vlgmr.msra.gmra.mxu0 %v152_v58 }
  0xc0   :  { %v106_v62 = vpop.xlane.xlu0 %105 }
  0xc1   :  { %v116_v63 = vpop.xlane.xlu1 %115  ;;  %v143_v2 = vmul.f32 0.00390625, %v106_v62 }
  0xc2   :  { %v145_v3 = vmul.f32 0.00390625, %v116_v63 }
  0xc3   :  { %v252_v8 = vrot.slane %v143_v2, %v251_v1 }
  0xc4   :  { %v111_v4 = vpop.xlane.xlu0 %110  ;;  %v260_v0 = vrot.slane %v145_v3, %v251_v1 }
  0xc5   :  { %v121_v5 = vpop.xlane.xlu1 %120  ;;  %v144_v6 = vmul.f32 0.00390625, %v111_v4 }
  0xc6   :  { %v146_v7 = vmul.f32 0.00390625, %v121_v5 }
  0xc7   :  { %v256_v9 = vrot.slane %v144_v6, %v251_v1 }
  0xc8   :  { %v264_v10 = vrot.slane %v146_v7, %v251_v1  ;;  %v126_v11 = vpop.xlane.xlu0 %125 }
  0xc9   :  { %v131_v12 = vpop.xlane.xlu1 %130  ;;  %v282_v13 = vsel %vm281_vm2, %v256_v9, %v252_v8  ;;  %v147_v14 = vmul.f32 0.00390625, %v126_v11 }
  0xca   :  { %v148_v15 = vmul.f32 0.00390625, %v131_v12  ;;  %v284_v16 = vsel %vm283_vm3, %v260_v0, %v282_v13 }
  0xcb   :  { %v286_v17 = vsel %vm285_vm4, %v264_v10, %v284_v16  ;;  %v268_v18 = vrot.slane %v147_v14, %v251_v1 }
  0xcc   :  { %v272_v19 = vrot.slane %v148_v15, %v251_v1  ;;  %v136_v20 = vpop.xlane.xlu0 %135 }
  0xcd   :  { %v141_v21 = vpop.xlane.xlu1 %140  ;;  %v288_v22 = vsel %vm287_vm5, %v268_v18, %v286_v17  ;;  %v149_v23 = vmul.f32 0.00390625, %v136_v20 }
  0xce   :  { %v150_v24 = vmul.f32 0.00390625, %v141_v21  ;;  %v290_v27 = vsel %vm289_vm6, %v272_v19, %v288_v22 }
  0xcf   :  { %v276_v25 = vrot.slane %v149_v23, %v251_v1 }
  0xd0   :  { %v280_v26 = vrot.slane %v150_v24, %v251_v1 }
  0xd1   :  { %v292_v28 = vsel %vm291_vm7, %v276_v25, %v290_v27 }
  0xd2   :  { %v294_v29 = vsel %vm293_vm8, %v280_v26, %v292_v28 }
  0xd3   :  { %461 = vmatmul.mubr.msk.f32.vlgmr.msra.gmra.mxu1 %vm295_vm9, %v294_v29 }
 0x114   :  { %v235_v30 = vpop.f32.mrf.mxu0 }
 0x116   :  { %v457_v31 = vpop.f32.mrf.mxu0 }
 0x193   :  { %v367_v32 = vpop.f32.mrf.mxu1 }
 0x194   :  { %v368_v33 = vadd.f32 %v367_v32, %v235_v30 }
 0x195   :  { %v462_v34 = vpop.f32.mrf.mxu1 }
 0x196   :  { %371 = vmax.xlane.f32.xlu0 %v368_v33 }
 0x21f   :  { %v372_v35 = vpop.xlane.xlu0 %371 }
 0x220   :  { %v373_v36 = vsub.f32 %v368_v33, %v372_v35 }
 0x222   :  { %v374_v37 = vmul.f32 1.442695, %v373_v36 }
 0x224   :  { %480 = vpow2.f32 %v374_v37 }
 0x231   :  { %v481_v38 = vpop.eup %480 }
 0x232   :  { %376 = vadd.xlane.f32.xlu1 %v481_v38 }
 0x2bb   :  { %v377_v39 = vpop.xlane.xlu1 %376 }
 0x2bc   :  { %482 = vlog2.f32 %v377_v39 }
 0x2c9   :  { %v483_v40 = vpop.eup %482 }
 0x2ca   :  { %v379_v41 = vmul.f32 0.6931472, %v483_v40 }
 0x2cc   :  { %v380_v42 = vsub.f32 %v373_v36, %v379_v41 }
 0x2ce   :  { %v381_v43 = vmul.f32 0.5, %v380_v42 }
 0x2d0   :  { %v382_v44 = vmul.f32 1.442695, %v381_v43 }
 0x2d2   :  { %484 = vpow2.f32 %v382_v44 }
 0x2df   :  { %v485_v45 = vpop.eup %484 }
 0x2e0   :  { %384 = vst [vmem:[#allocation10] sm:$0xff] %v485_v45 }
 0x2e1   :  { %577 = shalt.err (!%p574_p10)
}
 0x2e2   :  { %394 = dma.vmem_to_hbm [thread:$0]  %s392_s3, 128, %s683_s4, [#allocation4]  }
 0x2e3   :  { %592 = dma.done.wait [#allocation4], 128  }
 0x2e4   :  { %593 = vsyncadd [#allocation4], 4294967168 }
 0x2e5   :  { %398 = vsyncpa [#allocation3], 1 }
 0x2e6   :  { %399 = vsyncpa [#allocation6], 1 }
 0x2e7   :  { %400 = vsyncpa [#allocation9], 1 }
 0x2e8   :  { %401 = vsyncpa [#allocation4], 1 }

</bundles_post_ra>
